<compile_context>
chip_gen: v6e
topology: v6e:2x2x1
jax: 0.10.0
libtpu: 0.0.40
codegen_flags: <defaults>
</compile_context>

<pallas_src>
import jax
import jax.numpy as jnp
from jax.experimental import pallas as pl
from jax.experimental.pallas import tpu as pltpu

# 'lrelu' preset coefficients (deterministic, from the module's _presets)
A_LRELU = (0.029792778657264946, 0.6183735264987601, 2.323309062531321,
           3.051936237265109, 1.4854203263828845, 0.2510244961111299)
B_LRELU = (-1.1419548357285474, 4.393159974992486, 0.8714712309957245,
           0.34719662339598834)

M = 6  # numerator coefficients (exponents 0..5)
N = 4  # denominator coefficients (exponents 1..4)

LANES = 1024          # lane-dense last dim (multiple of 128)
MAX_TILE_ROWS = 512   # 512 x 1024 x f32 = 2 MiB per block


def _make_rational_kernel(a, b):
    """Bake coefficients as immediates; return the Pallas kernel body."""
    a = tuple(float(v) for v in a)
    b_abs = tuple(abs(float(v)) for v in b)

    def kernel(x_ref, o_ref):
        x = x_ref[...]

        # Numerator p(x) = sum_j a_j x^j via Horner (VPU elementwise).
        p = jnp.full_like(x, a[M - 1])
        for j in range(M - 2, -1, -1):
            p = p * x + a[j]

        # Denominator q(x) = sum_k |b_{k-1}| |x|^k + 1 via Horner on |x|,
        # initialized with |b_{N-1}| (no wasted multiply-by-zero step).
        ax = jnp.abs(x)
        q = jnp.full_like(ax, b_abs[N - 1])
        for k in range(N - 2, -1, -1):
            q = q * ax + b_abs[k]
        q = q * ax + 1.0

        o_ref[...] = p / q

    return kernel


def rational(x, a=A_LRELU, b=B_LRELU):
    """Elementwise rational activation; accepts any shape/float dtype."""
    orig_shape = x.shape
    orig_dtype = x.dtype

    xf = x.reshape(-1).astype(jnp.float32)
    n = xf.size

    # Pick the biggest tile (up to 2 MiB) that still leaves at least 2 grid
    # steps when the input is large enough; shrink for small inputs so the
    # padding overhead stays bounded.
    tile_rows = MAX_TILE_ROWS
    while tile_rows > 8 and n <= tile_rows * LANES:
        tile_rows //= 2
    block = tile_rows * LANES

    n_pad = pl.cdiv(n, block) * block
    if n_pad != n:
        xf = jnp.pad(xf, (0, n_pad - n))  # pads with 0; p(0)/q(0) is finite
    x2 = xf.reshape(n_pad // LANES, LANES)
    grid = (x2.shape[0] // tile_rows,)

    out2 = pl.pallas_call(
        _make_rational_kernel(a, b),
        out_shape=jax.ShapeDtypeStruct(x2.shape, jnp.float32),
        grid_spec=pltpu.PrefetchScalarGridSpec(
            num_scalar_prefetch=0,
            grid=grid,
            in_specs=[pl.BlockSpec((tile_rows, LANES), lambda i: (i, 0))],
            out_specs=pl.BlockSpec((tile_rows, LANES), lambda i: (i, 0)),
        ),
        compiler_params=pltpu.CompilerParams(
            dimension_semantics=("parallel",)),
    )(x2)

    out = out2.reshape(-1)[:n].reshape(orig_shape)
    return out.astype(orig_dtype)


def rational_ref(x, a=A_LRELU, b=B_LRELU):
    """Plain-JAX reference mirroring the PyTorch forward exactly."""
    a = jnp.asarray(a, jnp.float32)
    b = jnp.asarray(b, jnp.float32)
    j = jnp.arange(M, dtype=jnp.float32).reshape((M,) + (1,) * x.ndim)
    k = (jnp.arange(N, dtype=jnp.float32) + 1.0).reshape((N,) + (1,) * x.ndim)
    ab = a.reshape((M,) + (1,) * x.ndim)
    bb = b.reshape((N,) + (1,) * x.ndim)
    xf = x.astype(jnp.float32)
    p = jnp.sum(ab * xf[None] ** j, axis=0)
    q = jnp.sum(jnp.abs(bb * xf[None] ** k), axis=0) + 1.0
    return (p / q).astype(x.dtype)


if __name__ == "__main__":
    key = jax.random.PRNGKey(0)
    k1, k2 = jax.random.split(key)

    # small 2-D input (num_dims=2): spatial map 16 x 128
    x = jax.random.normal(k1, (16, 128), dtype=jnp.float32) * 2.0
    out = jax.block_until_ready(rational(x))
    ref = rational_ref(x)
    assert out.shape == x.shape and out.dtype == x.dtype
    assert jnp.allclose(out, ref, rtol=1e-5, atol=1e-5), (
        float(jnp.max(jnp.abs(out - ref))))

    # odd shape to exercise the padding / lane-dense-reshape path
    x2 = jax.random.normal(k2, (12, 50), dtype=jnp.float32) * 3.0
    out2 = jax.block_until_ready(rational(x2))
    ref2 = rational_ref(x2)
    assert out2.shape == x2.shape
    assert jnp.allclose(out2, ref2, rtol=1e-5, atol=1e-5), (
        float(jnp.max(jnp.abs(out2 - ref2))))

    print("KERNEL_OK")
</pallas_src>

<mosaic_0001>
module attributes {stable_mosaic.version = 11 : i64} {
  func.func @kernel(%arg0: i32, %arg1: memref<8x1024xf32, #tpu.memory_space<vmem>>, %arg2: memref<8x1024xf32, #tpu.memory_space<vmem>>) attributes {dimension_semantics = [#tpu.dimension_semantics<parallel>], iteration_bounds = array<i64: 1>, scalar_prefetch = 0 : i64, scratch_operands = 0 : i64, tpu.core_type = #tpu.core_type<tc>, window_params = [{transform_indices = @transform_0, window_bounds = array<i64: 8, 1024>}, {transform_indices = @transform_1, window_bounds = array<i64: 8, 1024>}]} {
    %c0 = arith.constant 0 : index
    %c0_0 = arith.constant 0 : index
    %0 = vector.load %arg1[%c0, %c0_0] : memref<8x1024xf32, #tpu.memory_space<vmem>>, vector<8x1024xf32>
    %cst = arith.constant 0.251024485 : f32
    %1 = vector.broadcast %cst : f32 to vector<8x1024xf32>
    %2 = arith.mulf %1, %0 : vector<8x1024xf32>
    %cst_1 = arith.constant 1.48542035 : f32
    %3 = vector.broadcast %cst_1 : f32 to vector<8x1024xf32>
    %4 = arith.addf %2, %3 : vector<8x1024xf32>
    %5 = arith.mulf %4, %0 : vector<8x1024xf32>
    %cst_2 = arith.constant 3.05193615 : f32
    %6 = vector.broadcast %cst_2 : f32 to vector<8x1024xf32>
    %7 = arith.addf %5, %6 : vector<8x1024xf32>
    %8 = arith.mulf %7, %0 : vector<8x1024xf32>
    %cst_3 = arith.constant 2.32330894 : f32
    %9 = vector.broadcast %cst_3 : f32 to vector<8x1024xf32>
    %10 = arith.addf %8, %9 : vector<8x1024xf32>
    %11 = arith.mulf %10, %0 : vector<8x1024xf32>
    %cst_4 = arith.constant 0.618373513 : f32
    %12 = vector.broadcast %cst_4 : f32 to vector<8x1024xf32>
    %13 = arith.addf %11, %12 : vector<8x1024xf32>
    %14 = arith.mulf %13, %0 : vector<8x1024xf32>
    %cst_5 = arith.constant 0.0297927782 : f32
    %15 = vector.broadcast %cst_5 : f32 to vector<8x1024xf32>
    %16 = arith.addf %14, %15 : vector<8x1024xf32>
    %17 = math.absf %0 : vector<8x1024xf32>
    %cst_6 = arith.constant 0.347196609 : f32
    %18 = vector.broadcast %cst_6 : f32 to vector<8x1024xf32>
    %19 = arith.mulf %18, %17 : vector<8x1024xf32>
    %cst_7 = arith.constant 0.871471226 : f32
    %20 = vector.broadcast %cst_7 : f32 to vector<8x1024xf32>
    %21 = arith.addf %19, %20 : vector<8x1024xf32>
    %22 = arith.mulf %21, %17 : vector<8x1024xf32>
    %cst_8 = arith.constant 4.393160e+00 : f32
    %23 = vector.broadcast %cst_8 : f32 to vector<8x1024xf32>
    %24 = arith.addf %22, %23 : vector<8x1024xf32>
    %25 = arith.mulf %24, %17 : vector<8x1024xf32>
    %cst_9 = arith.constant 1.14195478 : f32
    %26 = vector.broadcast %cst_9 : f32 to vector<8x1024xf32>
    %27 = arith.addf %25, %26 : vector<8x1024xf32>
    %28 = arith.mulf %27, %17 : vector<8x1024xf32>
    %cst_10 = arith.constant 1.000000e+00 : f32
    %29 = vector.broadcast %cst_10 : f32 to vector<8x1024xf32>
    %30 = arith.addf %28, %29 : vector<8x1024xf32>
    %31 = arith.divf %16, %30 : vector<8x1024xf32>
    %c0_11 = arith.constant 0 : index
    %c0_12 = arith.constant 0 : index
    %32 = vector.load %arg2[%c0_11, %c0_12] : memref<8x1024xf32, #tpu.memory_space<vmem>>, vector<8x1024xf32>
    tpu.vector_store %arg2[%c0_11, %c0_12], %31 {strides = array<i32>} : memref<8x1024xf32, #tpu.memory_space<vmem>>, vector<8x1024xf32>,
    return
  }
  func.func @transform_0(%arg0: i32) -> (i32, i32) {
    %c0_i32 = arith.constant 0 : i32
    %c0_i32_0 = arith.constant 0 : i32
    return %arg0, %c0_i32 : i32, i32
  }
  func.func @transform_1(%arg0: i32) -> (i32, i32) {
    %c0_i32 = arith.constant 0 : i32
    %c0_i32_0 = arith.constant 0 : i32
    return %arg0, %c0_i32 : i32, i32
  }
}

</mosaic_0001>

<bundles_post_ra>
// kernel: tpu_custom_call.1
= control target key start
LH: loop header
LB: loop body
LE: loop exit
PB: predicated region body
PF: predicated region fallthrough
CT: control target
= control target key end

     0   :  { %6 = vsyncpa [#allocation3], 0  ;;  %s362_s0 = inlined_call_operand.hbm [shape: f32[8,1024], index: 0, kind: input, shape index: {}]   ;;  %s363_s1 = inlined_call_operand.hbm [shape: f32[8,1024], index: 1, kind: output, shape index: {}]  }
   0x1   :  { %7 = vsyncpa [#allocation4], 0  ;;  %s282_s6 = smov [#allocation2]  }
   0x2   :  { %s14_s7 = sshll.u32 %s282_s6, 4  ;;  %s15_s7 = int_to_ptr.vmem [resolvable:$true] %s14_s7 }
   0x3   :  { %s246_s8 = scalar_lea.vmem %s15_s7, 1024  ;;  %p251_p1 = scmp.lt.s32.totalorder %s15_s7, %s15_s7 }
   0x4   :  { %p247_p0 = scmp.ne.s32.totalorder %s15_s7, %s246_s8  ;;  %p252_p2 = scmp.lt.s32.totalorder %s246_s8, %s246_s8 }
   0x6   :  { %p253_p3 = por %p252_p2, %p251_p1 }
   0x8   :  { %p254_p4 = pnand %p253_p3, %p247_p0 }
   0xa   :  { %257 = shalt.err (!%p254_p4)
}
   0xb   :  { %17 = dma.hbm_to_vmem [thread:$0]  %s362_s0, 1024, %s15_s7, [#allocation3]  }
   0xc   :  { %278 = dma.done.wait [#allocation3], 1024  }
   0xd   :  { %279 = vsyncadd [#allocation3], 4294966272  ;;  %v21_v0 = vld [vmem:[#allocation2] sm:$0xff]  ;;  %v297_v1 = vld [vmem:[#allocation2 + $0x8] sm:$0xff]  ;;  %s283_s0 = smov [#allocation5]  }
   0xe   :  { %v299_v2 = vld [vmem:[#allocation2 + $0x10] sm:$0xff]  ;;  %v29_v3 = vmul.f32 0.25102448, %v21_v0  ;;  %v109_v4 = vand.u32 2147483647, %v21_v0  ;;  %v306_v18 = vld [vmem:[#allocation2 + $0x18] sm:$0xff] }
   0xf   :  { %v30_v5 = vmul.f32 0.25102448, %v297_v1  ;;  %v110_v6 = vand.u32 2147483647, %v297_v1  ;;  %v31_v7 = vmul.f32 0.25102448, %v299_v2 }
  0x10   :  { %v111_v8 = vand.u32 2147483647, %v299_v2  ;;  %v37_v9 = vadd.f32 1.4854203, %v29_v3  ;;  %v117_v10 = vmul.f32 0.3471966, %v109_v4 }
  0x11   :  { %v38_v11 = vadd.f32 1.4854203, %v30_v5  ;;  %v118_v12 = vmul.f32 0.3471966, %v110_v6  ;;  %v39_v13 = vadd.f32 1.4854203, %v31_v7 }
  0x12   :  { %v119_v14 = vmul.f32 0.3471966, %v111_v8  ;;  %v45_v15 = vmul.f32 %v37_v9, %v21_v0  ;;  %v125_v16 = vadd.f32 0.8714712, %v117_v10  ;;  %v32_v22 = vmul.f32 0.25102448, %v306_v18 }
  0x13   :  { %v46_v17 = vmul.f32 %v38_v11, %v297_v1  ;;  %v126_v19 = vadd.f32 0.8714712, %v118_v12  ;;  %v47_v20 = vmul.f32 %v39_v13, %v299_v2  ;;  %v112_v26 = vand.u32 2147483647, %v306_v18  ;;  %v317_v9 = vld [vmem:[#allocation2 + $0x20] sm:$0xff]  ;;  %v319_v12 = vld [vmem:[#allocation2 + $0x28] sm:$0xff] }
  0x14   :  { %v127_v21 = vadd.f32 0.8714712, %v119_v14  ;;  %v53_v23 = vadd.f32 3.0519361, %v45_v15  ;;  %v133_v24 = vmul.f32 %v125_v16, %v109_v4  ;;  %v40_v30 = vadd.f32 1.4854203, %v32_v22 }
  0x15   :  { %v54_v25 = vadd.f32 3.0519361, %v46_v17  ;;  %v134_v27 = vmul.f32 %v126_v19, %v110_v6  ;;  %v55_v28 = vadd.f32 3.0519361, %v47_v20  ;;  %v120_v34 = vmul.f32 0.3471966, %v112_v26 }
  0x16   :  { %v135_v29 = vmul.f32 %v127_v21, %v111_v8  ;;  %v61_v31 = vmul.f32 %v53_v23, %v21_v0  ;;  %v141_v32 = vadd.f32 4.39316, %v133_v24  ;;  %v48_v38 = vmul.f32 %v40_v30, %v306_v18  ;;  %v325_v15 = vld [vmem:[#allocation2 + $0x30] sm:$0xff]  ;;  %s211_s11 = sshll.u32 %s283_s0, 4  ;;  %s212_s11 = int_to_ptr.vmem [resolvable:$true] %s211_s11 }
  0x17   :  { %v62_v33 = vmul.f32 %v54_v25, %v297_v1  ;;  %v142_v35 = vadd.f32 4.39316, %v134_v27  ;;  %v63_v36 = vmul.f32 %v55_v28, %v299_v2  ;;  %v128_v42 = vadd.f32 0.8714712, %v120_v34  ;;  %v331_v25 = vld [vmem:[#allocation2 + $0x38] sm:$0xff]  ;;  %s258_s12 = scalar_lea.vmem %s212_s11, 1024  ;;  %p263_p6 = scmp.lt.s32.totalorder %s212_s11, %s212_s11 }
  0x18   :  { %v143_v37 = vadd.f32 4.39316, %v135_v29  ;;  %v69_v39 = vadd.f32 2.323309, %v61_v31  ;;  %v149_v40 = vmul.f32 %v141_v32, %v109_v4  ;;  %v56_v46 = vadd.f32 3.0519361, %v48_v38  ;;  %p259_p5 = scmp.ne.s32.totalorder %s212_s11, %s258_s12  ;;  %p264_p7 = scmp.lt.s32.totalorder %s258_s12, %s258_s12 }
  0x19   :  { %v70_v41 = vadd.f32 2.323309, %v62_v33  ;;  %v150_v43 = vmul.f32 %v142_v35, %v110_v6  ;;  %v71_v44 = vadd.f32 2.323309, %v63_v36  ;;  %v136_v49 = vmul.f32 %v128_v42, %v112_v26 }
  0x1a   :  { %v151_v45 = vmul.f32 %v143_v37, %v111_v8  ;;  %v77_v47 = vmul.f32 %v69_v39, %v21_v0  ;;  %v157_v48 = vadd.f32 1.1419548, %v149_v40  ;;  %v64_v53 = vmul.f32 %v56_v46, %v306_v18  ;;  %p265_p8 = por %p264_p7, %p263_p6 }
  0x1b   :  { %v78_v50 = vmul.f32 %v70_v41, %v297_v1  ;;  %v158_v51 = vadd.f32 1.1419548, %v150_v43  ;;  %v79_v56 = vmul.f32 %v71_v44, %v299_v2  ;;  %v144_v57 = vadd.f32 4.39316, %v136_v49 }
  0x1c   :  { %v159_v52 = vadd.f32 1.1419548, %v151_v45  ;;  %v85_v54 = vadd.f32 0.6183735, %v77_v47  ;;  %v165_v55 = vmul.f32 %v157_v48, %v109_v4  ;;  %v72_v60 = vadd.f32 2.323309, %v64_v53  ;;  %p266_p9 = pnand %p265_p8, %p259_p5 }
  0x1d   :  { %v166_v58 = vmul.f32 %v158_v51, %v110_v6  ;;  %v152_v63 = vmul.f32 %v144_v57, %v112_v26  ;;  %v86_v3 = vadd.f32 0.6183735, %v78_v50  ;;  %v87_v10 = vadd.f32 0.6183735, %v79_v56 }
  0x1e   :  { %v167_v59 = vmul.f32 %v159_v52, %v111_v8  ;;  %v93_v61 = vmul.f32 %v85_v54, %v21_v0  ;;  %v173_v62 = vadd.f32 1.0, %v165_v55  ;;  %v80_v13 = vmul.f32 %v72_v60, %v306_v18 }
  0x1f   :  { %v174_v5 = vadd.f32 1.0, %v166_v58  ;;  %v160_v11 = vadd.f32 1.1419548, %v152_v63  ;;  %v33_v6 = vmul.f32 0.25102448, %v317_v9  ;;  %v94_v16 = vmul.f32 %v86_v3, %v297_v1 }
  0x20   :  { %v175_v7 = vadd.f32 1.0, %v167_v59  ;;  %222 = vrcp.f32 %v173_v62  ;;  %v101_v4 = vadd.f32 0.029792778, %v93_v61  ;;  %v113_v8 = vand.u32 2147483647, %v317_v9 }
  0x21   :  { %224 = vrcp.f32 %v174_v5  ;;  %v168_v0 = vmul.f32 %v160_v11, %v112_v26  ;;  %v34_v14 = vmul.f32 0.25102448, %v319_v12  ;;  %v41_v17 = vadd.f32 1.4854203, %v33_v6 }
  0x22   :  { %226 = vrcp.f32 %v175_v7  ;;  %v114_v19 = vand.u32 2147483647, %v319_v12  ;;  %v35_v20 = vmul.f32 0.25102448, %v325_v15  ;;  %v95_v21 = vmul.f32 %v87_v10, %v299_v2 }
  0x23   :  { %v176_v22 = vadd.f32 1.0, %v168_v0  ;;  %v121_v23 = vmul.f32 0.3471966, %v113_v8  ;;  %v42_v24 = vadd.f32 1.4854203, %v34_v14  ;;  %v49_v27 = vmul.f32 %v41_v17, %v317_v9 }
  0x24   :  { %v88_v26 = vadd.f32 0.6183735, %v80_v13  ;;  %v122_v28 = vmul.f32 0.3471966, %v114_v19  ;;  %v43_v29 = vadd.f32 1.4854203, %v35_v20 }
  0x25   :  { %228 = vrcp.f32 %v176_v22  ;;  %v129_v30 = vadd.f32 0.8714712, %v121_v23  ;;  %v50_v1 = vmul.f32 %v42_v24, %v319_v12  ;;  %v115_v31 = vand.u32 2147483647, %v325_v15 }
  0x26   :  { %v57_v32 = vadd.f32 3.0519361, %v49_v27  ;;  %v130_v33 = vadd.f32 0.8714712, %v122_v28  ;;  %v51_v2 = vmul.f32 %v43_v29, %v325_v15  ;;  %v36_v34 = vmul.f32 0.25102448, %v331_v25 }
  0x27   :  { %v137_v35 = vmul.f32 %v129_v30, %v113_v8  ;;  %v58_v36 = vadd.f32 3.0519361, %v50_v1  ;;  %v123_v37 = vmul.f32 0.3471966, %v115_v31  ;;  %v339_v38 = vand.u32 2147483647, %v331_v25 }
  0x28   :  { %v65_v39 = vmul.f32 %v57_v32, %v317_v9  ;;  %v138_v40 = vmul.f32 %v130_v33, %v114_v19  ;;  %v59_v41 = vadd.f32 3.0519361, %v51_v2  ;;  %v44_v42 = vadd.f32 1.4854203, %v36_v34 }
  0x29   :  { %v145_v43 = vadd.f32 4.39316, %v137_v35  ;;  %v131_v44 = vadd.f32 0.8714712, %v123_v37  ;;  %v124_v45 = vmul.f32 0.3471966, %v339_v38  ;;  %v66_v47 = vmul.f32 %v58_v36, %v319_v12 }
  0x2a   :  { %v102_v46 = vadd.f32 0.029792778, %v94_v16  ;;  %v146_v48 = vadd.f32 4.39316, %v138_v40  ;;  %v103_v49 = vadd.f32 0.029792778, %v95_v21  ;;  %v96_v50 = vmul.f32 %v88_v26, %v306_v18 }
  0x2b   :  { %v153_v51 = vmul.f32 %v145_v43, %v113_v8  ;;  %v139_v52 = vmul.f32 %v131_v44, %v115_v31  ;;  %v73_v54 = vadd.f32 2.323309, %v65_v39  ;;  %v67_v56 = vmul.f32 %v59_v41, %v325_v15 }
  0x2c   :  { %v154_v55 = vmul.f32 %v146_v48, %v114_v19  ;;  %v52_v57 = vmul.f32 %v44_v42, %v331_v25  ;;  %v132_v62 = vadd.f32 0.8714712, %v124_v45  ;;  %v74_v5 = vadd.f32 2.323309, %v66_v47 }
  0x2d   :  { %v223_v53 = vpop.eup %222  ;;  %v161_v60 = vadd.f32 1.1419548, %v153_v51  ;;  %v147_v61 = vadd.f32 4.39316, %v139_v52  ;;  %v104_v10 = vadd.f32 0.029792778, %v96_v50  ;;  %v81_v6 = vmul.f32 %v73_v54, %v317_v9 }
  0x2e   :  { %v225_v58 = vpop.eup %224  ;;  %v182_v59 = vmul.f32 %v223_v53, %v101_v4  ;;  %v162_v7 = vadd.f32 1.1419548, %v154_v55  ;;  %v60_v14 = vadd.f32 3.0519361, %v52_v57  ;;  %v75_v4 = vadd.f32 2.323309, %v67_v56 }
  0x2f   :  { %v227_v63 = vpop.eup %226  ;;  %v184_v3 = vmul.f32 %v225_v58, %v102_v46  ;;  %v169_v11 = vmul.f32 %v161_v60, %v113_v8  ;;  %v155_v13 = vmul.f32 %v147_v61, %v115_v31  ;;  %v140_v20 = vmul.f32 %v132_v62, %v339_v38 }
  0x30   :  { %197 = vst [vmem:[#allocation5] sm:$0xff] %v182_v59  ;;  %v186_v18 = vmul.f32 %v227_v63, %v103_v49  ;;  %v170_v0 = vmul.f32 %v162_v7, %v114_v19  ;;  %v82_v22 = vmul.f32 %v74_v5, %v319_v12  ;;  %v68_v8 = vmul.f32 %v60_v14, %v331_v25 }
  0x31   :  { %198 = vst [vmem:[#allocation5 + $0x8] sm:$0xff] %v184_v3  ;;  %v177_v16 = vadd.f32 1.0, %v169_v11  ;;  %v163_v17 = vadd.f32 1.1419548, %v155_v13  ;;  %v148_v27 = vadd.f32 4.39316, %v140_v20  ;;  %v83_v28 = vmul.f32 %v75_v4, %v325_v15 }
  0x32   :  { %199 = vst [vmem:[#allocation5 + $0x10] sm:$0xff] %v186_v18  ;;  %v229_v21 = vpop.eup %228  ;;  %v178_v23 = vadd.f32 1.0, %v170_v0  ;;  %v89_v19 = vadd.f32 0.6183735, %v81_v6  ;;  %v90_v30 = vadd.f32 0.6183735, %v82_v22 }
  0x33   :  { %v188_v24 = vmul.f32 %v229_v21, %v104_v10  ;;  %230 = vrcp.f32 %v177_v16  ;;  %v171_v26 = vmul.f32 %v163_v17, %v115_v31  ;;  %v156_v1 = vmul.f32 %v148_v27, %v339_v38 }
  0x34   :  { %232 = vrcp.f32 %v178_v23  ;;  %v76_v32 = vadd.f32 2.323309, %v68_v8  ;;  %v97_v2 = vmul.f32 %v89_v19, %v317_v9  ;;  %v91_v34 = vadd.f32 0.6183735, %v83_v28 }
  0x35   :  { %200 = vst [vmem:[#allocation5 + $0x18] sm:$0xff] %v188_v24  ;;  %v179_v29 = vadd.f32 1.0, %v171_v26  ;;  %v164_v33 = vadd.f32 1.1419548, %v156_v1  ;;  %v98_v31 = vmul.f32 %v90_v30, %v319_v12 }
  0x36   :  { %v84_v36 = vmul.f32 %v76_v32, %v331_v25  ;;  %v105_v39 = vadd.f32 0.029792778, %v97_v2  ;;  %v99_v40 = vmul.f32 %v91_v34, %v325_v15 }
  0x37   :  { %234 = vrcp.f32 %v179_v29  ;;  %v172_v35 = vmul.f32 %v164_v33, %v339_v38  ;;  %v106_v41 = vadd.f32 0.029792778, %v98_v31 }
  0x38   :  { %v92_v43 = vadd.f32 0.6183735, %v84_v36  ;;  %v107_v46 = vadd.f32 0.029792778, %v99_v40 }
  0x39   :  { %v180_v37 = vadd.f32 1.0, %v172_v35 }
  0x3a   :  { %v100_v12 = vmul.f32 %v92_v43, %v331_v25 }
  0x3b   :  { %236 = vrcp.f32 %v180_v37 }
  0x3c   :  { %v108_v48 = vadd.f32 0.029792778, %v100_v12 }
  0x40   :  { %v231_v42 = vpop.eup %230 }
  0x41   :  { %v233_v44 = vpop.eup %232  ;;  %v190_v45 = vmul.f32 %v231_v42, %v105_v39 }
  0x42   :  { %v192_v47 = vmul.f32 %v233_v44, %v106_v41 }
  0x43   :  { %201 = vst [vmem:[#allocation5 + $0x20] sm:$0xff] %v190_v45 }
  0x44   :  { %v235_v9 = vpop.eup %234  ;;  %202 = vst [vmem:[#allocation5 + $0x28] sm:$0xff] %v192_v47 }
  0x45   :  { %v194_v38 = vmul.f32 %v235_v9, %v107_v46 }
  0x47   :  { %203 = vst [vmem:[#allocation5 + $0x30] sm:$0xff] %v194_v38 }
  0x48   :  { %v237_v49 = vpop.eup %236 }
  0x49   :  { %v196_v15 = vmul.f32 %v237_v49, %v108_v48 }
  0x4b   :  { %204 = vst [vmem:[#allocation5 + $0x38] sm:$0xff] %v196_v15 }
  0x4c   :  { %269 = shalt.err (!%p266_p9)
}
  0x4d   :  { %214 = dma.vmem_to_hbm [thread:$0]  %s212_s11, 1024, %s363_s1, [#allocation4]  }
  0x4e   :  { %280 = dma.done.wait [#allocation4], 1024  }
  0x4f   :  { %281 = vsyncadd [#allocation4], 4294966272 }
  0x50   :  { %218 = vsyncpa [#allocation3], 1 }
  0x51   :  { %219 = vsyncpa [#allocation4], 1 }

</bundles_post_ra>
